<compile_context>
chip_gen: v5e
topology: v5e:2x2
jax: 0.10.0
libtpu: 0.0.40
codegen_flags: <defaults>
</compile_context>

<pallas_src>
import jax
import jax.numpy as jnp
from jax.experimental import pallas as pl
from jax.experimental.pallas import tpu as pltpu


def _single_variance_kernel(var_ref, out_ref):
    # var_ref: (1,) f32 in SMEM.  out_ref: (block_rows, 128) block in VMEM.
    scaled = var_ref[0] * 10.0                                   # scalar (sreg)
    row = jnp.exp(jnp.full((1, 128), scaled, jnp.float32))       # one-vreg exp (EUP)
    out_ref[...] = jnp.broadcast_to(row, out_ref.shape).astype(out_ref.dtype)


def single_variance_forward(x, variance, *, max_block_rows=512):
    """ones([len(x), 1]) * exp(variance * 10.0), computed by a Pallas kernel."""
    n = x.shape[0]
    out_dtype = jnp.asarray(variance).dtype

    # Lane-dense output layout: 128 samples per row.
    rows = pl.cdiv(n, 128)
    if rows <= max_block_rows:
        block_rows = max(8, ((rows + 7) // 8) * 8)   # multiple of 8 sublanes
    else:
        block_rows = max_block_rows
    rows_pad = ((rows + block_rows - 1) // block_rows) * block_rows
    grid = (rows_pad // block_rows,)

    var_arr = jnp.asarray(variance, jnp.float32).reshape(1)

    out = pl.pallas_call(
        _single_variance_kernel,
        grid=grid,
        in_specs=[pl.BlockSpec(memory_space=pltpu.MemorySpace.SMEM)],
        out_specs=pl.BlockSpec((block_rows, 128), lambda i: (i, 0)),
        out_shape=jax.ShapeDtypeStruct((rows_pad, 128), out_dtype),
        compiler_params=pltpu.CompilerParams(
            dimension_semantics=("parallel",)),
    )(var_arr)

    # Back to the module's (N, 1) shape (all values identical, slice off padding).
    return out.reshape(rows_pad * 128, 1)[:n]


if __name__ == "__main__":
    key = jax.random.PRNGKey(0)
    n = 256
    # x's values are never used by the module forward — only len(x).
    x = jax.random.normal(key, (n, 3), jnp.float32)
    variance = jnp.float32(0.3)      # nn.Parameter(torch.tensor(init_val))

    out = jax.block_until_ready(single_variance_forward(x, variance))

    ref = jnp.ones((n, 1), jnp.float32) * jnp.exp(variance * 10.0)
    assert out.shape == (n, 1)
    assert out.dtype == ref.dtype
    assert jnp.allclose(out, ref, rtol=1e-5, atol=1e-5)
    print("KERNEL_OK")
</pallas_src>

<mosaic_0001>
module attributes {stable_mosaic.version = 11 : i64} {
  func.func @_single_variance_kernel(%arg0: i32, %arg1: memref<1xf32, #tpu.memory_space<smem>>, %arg2: memref<8x128xf32, #tpu.memory_space<vmem>>) attributes {dimension_semantics = [#tpu.dimension_semantics<parallel>], iteration_bounds = array<i64: 1>, scalar_prefetch = 0 : i64, scratch_operands = 0 : i64, tpu.core_type = #tpu.core_type<tc>, window_params = [{transform_indices = @transform_0, window_bounds = array<i64: 1>}, {transform_indices = @transform_1, window_bounds = array<i64: 8, 128>}]} {
    %c0 = arith.constant 0 : index
    %0 = memref.load %arg1[%c0] : memref<1xf32, #tpu.memory_space<smem>>
    %cst = arith.constant 1.000000e+01 : f32
    %1 = arith.mulf %0, %cst : f32
    %2 = vector.broadcast %1 : f32 to vector<1x128xf32>
    %3 = math.exp %2 : vector<1x128xf32>
    %4 = vector.shape_cast %3 : vector<1x128xf32> to vector<1x128xf32>
    %5 = vector.broadcast %4 : vector<1x128xf32> to vector<8x128xf32>
    %c0_0 = arith.constant 0 : index
    %c0_1 = arith.constant 0 : index
    %6 = vector.load %arg2[%c0_0, %c0_1] : memref<8x128xf32, #tpu.memory_space<vmem>>, vector<8x128xf32>
    tpu.vector_store %arg2[%c0_0, %c0_1], %5 {strides = array<i32>} : memref<8x128xf32, #tpu.memory_space<vmem>>, vector<8x128xf32>,
    return
  }
  func.func @transform_0(%arg0: i32) -> i32 {
    %c0_i32 = arith.constant 0 : i32
    %c0_i32_0 = arith.constant 0 : i32
    return %c0_i32 : i32
  }
  func.func @transform_1(%arg0: i32) -> (i32, i32) {
    %c0_i32 = arith.constant 0 : i32
    %c0_i32_0 = arith.constant 0 : i32
    return %arg0, %c0_i32 : i32, i32
  }
}

</mosaic_0001>

<bundles_post_ra>
// kernel: tpu_custom_call.1
= control target key start
LH: loop header
LB: loop body
LE: loop exit
PB: predicated region body
PF: predicated region fallthrough
CT: control target
= control target key end

     0   :  { %s78_s0 = inlined_call_operand.<no memory space> [shape: f32[1], index: 0, kind: input, shape index: {}]   ;;  %s79_s1 = inlined_call_operand.hbm [shape: f32[8,128], index: 1, kind: output, shape index: {}]  }
   0x1   :  { %s11_s8 = smul.f32 10.0, %s78_s0 }
   0x2   :  { %7 = vsyncpa [#allocation4], 0  ;;  %s61_s9 = smov [#allocation3]   ;;  %s23_s13 = sshll.u32 %s79_s1, 4  ;;  %s24_s13 = int_to_ptr.hbm [resolvable:$true] %s23_s13 }
   0x3   :  { %v12_v0 = vstv %s11_s8  ;;  %s21_s10 = sshll.u32 %s61_s9, 4  ;;  %s22_s10 = int_to_ptr.vmem [resolvable:$true] %s21_s10 }
   0x4   :  { %v13_v1 = vmul.f32 1.442695, %v12_v0 }
   0x6   :  { %33 = vpow2.f32 %v13_v1 }
   0xc   :  { %v34_v2 = vpop.eup %33 }
   0xd   :  { %15 = vst [vmem:[#allocation3] sm:$0xff] %v34_v2 }
   0xe   :  { %26 = dma.vmem_to_hbm [thread:$0]  %s22_s10, 128, %s24_s13, [#allocation4]  }
   0xf   :  { %59 = dma.done.wait [#allocation4], 128  }
  0x10   :  { %60 = vsyncadd [#allocation4], 4294967168 }
  0x11   :  { %31 = vsyncpa [#allocation4], 1 }

</bundles_post_ra>
